<compile_context>
chip_gen: v7x
topology: tpu7x:2x2x1
jax: 0.10.0
libtpu: 0.0.40
codegen_flags: <defaults>
</compile_context>

<pallas_src>
import jax
import jax.numpy as jnp
from jax.experimental import pallas as pl
from jax.experimental.pallas import tpu as pltpu


def _cdiv(a, b):
    return (a + b - 1) // b


def _round_up(x, m):
    return _cdiv(x, m) * m


def critic_kernel(x_ref, w1_ref, b1_ref, w2_ref, b2_ref, w3t_ref, b3_ref, o_ref):
    # fc1 + tanh  (bf16 MXU operands, f32 accumulation)
    x = x_ref[...].astype(jnp.bfloat16)
    h = jnp.dot(x, w1_ref[...], preferred_element_type=jnp.float32)
    h = jnp.tanh(h + b1_ref[...])
    # fc2 + tanh
    h = jnp.dot(h.astype(jnp.bfloat16), w2_ref[...], preferred_element_type=jnp.float32)
    h = jnp.tanh(h + b2_ref[...])
    # fc3 as a row-vector product: (1, hidden) . (block_b, hidden)^T -> (1, block_b)
    # so the per-tile result is lane-dense (full-width unmasked stores).
    v = jnp.einsum("oh,bh->ob", w3t_ref[...], h.astype(jnp.bfloat16),
                   preferred_element_type=jnp.float32)
    o_ref[...] = (v + b3_ref[0, 0]).astype(o_ref.dtype)


def _vmem_bytes_estimate(block_b, obs_dim, hidden):
    """Rough double-buffered VMEM footprint ((8,128)-padded tiles)."""
    def tile(r, c, itemsize):
        return _round_up(r, 8) * _round_up(c, 128) * itemsize
    state_bufs = 2 * tile(block_b, obs_dim, 4)            # pipelined f32 state tile
    out_bufs = 2 * tile(1, block_b, 4)                    # pipelined f32 value row
    weights = 2 * (tile(obs_dim, hidden, 2)               # bf16 W1 / W2 / W3^T
                   + tile(hidden, hidden, 2)
                   + tile(1, hidden, 2))
    biases = 2 * 2 * tile(1, hidden, 4)
    interm = 3 * tile(block_b, hidden, 4)                 # h (f32) + bf16 copies
    return state_bufs + out_bufs + weights + biases + interm


def mlp_critic_forward(state, w1, b1, w2, b2, w3, b3, *, block_b=None,
                       vmem_limit_bytes=None):
    """PPO critic: V(s) = fc3(tanh(fc2(tanh(fc1(state))))).

    state : (B, obs_dim) f32
    w1    : (obs_dim, hidden)  b1: (1, hidden)   [weights transposed vs. PyTorch]
    w2    : (hidden, hidden)   b2: (1, hidden)
    w3    : (hidden, 1)        b3: (1, 1)
    returns (B, 1) f32
    """
    B, obs_dim = state.shape
    hidden = w1.shape[1]
    assert w1.shape == (obs_dim, hidden)
    assert w2.shape == (hidden, hidden)
    assert w3.shape == (hidden, 1)

    if block_b is None:
        if B <= 128:
            block_b = 128
        elif B <= 1024:
            # ~half the batch rounded to 128 -> >=2 grid steps (v7x dual-TC)
            block_b = 128 * max(1, _cdiv(_cdiv(B, 2), 128))
        else:
            block_b = 512  # ~85% of HBM roofline per tile-size sweeps
    assert block_b % 128 == 0, "block_b must be a multiple of 128"

    est = _vmem_bytes_estimate(block_b, obs_dim, hidden)
    # Stay well inside v7x's scoped VMEM budget (~32 MiB of 64 MiB physical).
    assert est <= 32 * 1024 * 1024, "block_b too large for v7x VMEM; shrink block_b"
    if vmem_limit_bytes is None:
        vmem_limit_bytes = min(48 * 1024 * 1024, max(16 * 1024 * 1024, 4 * est))

    # Pad B to a multiple of block_b (keeps the (8,128) constraints, avoids
    # relying on implicit boundary masking); padded rows are sliced off below.
    B_pad = _round_up(B, block_b)
    x = state if B_pad == B else jnp.pad(state, ((0, B_pad - B), (0, 0)))
    grid = (B_pad // block_b,)

    # MXU-native bf16 weights; accumulation stays f32 inside the kernel.
    w1b = w1.astype(jnp.bfloat16)
    w2b = w2.astype(jnp.bfloat16)
    w3t = w3.reshape(hidden, 1).T.astype(jnp.bfloat16)     # (1, hidden)
    b1r = b1.reshape(1, hidden).astype(jnp.float32)
    b2r = b2.reshape(1, hidden).astype(jnp.float32)
    b3r = b3.reshape(1, 1).astype(jnp.float32)

    out = pl.pallas_call(
        critic_kernel,
        out_shape=jax.ShapeDtypeStruct((1, B_pad), jnp.float32),
        grid_spec=pltpu.PrefetchScalarGridSpec(
            num_scalar_prefetch=0,
            grid=grid,
            in_specs=[
                pl.BlockSpec((block_b, obs_dim), lambda i: (i, 0)),   # state (pipelined)
                pl.BlockSpec((obs_dim, hidden), lambda i: (0, 0)),    # W1 (resident)
                pl.BlockSpec((1, hidden), lambda i: (0, 0)),          # b1
                pl.BlockSpec((hidden, hidden), lambda i: (0, 0)),     # W2
                pl.BlockSpec((1, hidden), lambda i: (0, 0)),          # b2
                pl.BlockSpec((1, hidden), lambda i: (0, 0)),          # W3^T
                pl.BlockSpec(memory_space=pltpu.MemorySpace.SMEM),    # b3 scalar
            ],
            # Lane-dense output: each grid step writes one full-width
            # (1, block_b) slab of the value row.
            out_specs=pl.BlockSpec((1, block_b), lambda i: (0, i)),
        ),
        compiler_params=pltpu.CompilerParams(
            dimension_semantics=("parallel",),
            vmem_limit_bytes=int(vmem_limit_bytes),
        ),
    )(x, w1b, b1r, w2b, b2r, w3t, b3r)

    return out.reshape(B_pad, 1)[:B]


def mlp_critic_reference(state, w1, b1, w2, b2, w3, b3):
    """Pure-JAX f32 reference (exactly the PyTorch module's math)."""
    h = jnp.tanh(state @ w1 + b1.reshape(1, -1))
    h = jnp.tanh(h @ w2 + b2.reshape(1, -1))
    return h @ w3 + b3.reshape(1, 1)


def mlp_critic_value(state, params, *, min_pallas_batch=1024):
    """Dispatcher: per-step/launch overhead dominates tiny batches, so fall back
    to plain XLA below ~1k rows and use the Pallas kernel otherwise."""
    if state.shape[0] < min_pallas_batch:
        return mlp_critic_reference(state, *params)
    return mlp_critic_forward(state, *params)


def init_params(key, obs_dim, hidden_dim):
    """Deterministic synthetic init (PyTorch nn.Linear default-ish uniform)."""
    ks = jax.random.split(key, 6)

    def uni(k, shape, fan_in):
        bound = 1.0 / jnp.sqrt(float(fan_in))
        return jax.random.uniform(k, shape, jnp.float32, -bound, bound)

    w1 = uni(ks[0], (obs_dim, hidden_dim), obs_dim)
    b1 = uni(ks[1], (1, hidden_dim), obs_dim)
    w2 = uni(ks[2], (hidden_dim, hidden_dim), hidden_dim)
    b2 = uni(ks[3], (1, hidden_dim), hidden_dim)
    w3 = uni(ks[4], (hidden_dim, 1), hidden_dim)
    b3 = uni(ks[5], (1, 1), hidden_dim)
    return w1, b1, w2, b2, w3, b3


if __name__ == "__main__":
    key = jax.random.PRNGKey(0)
    k_state, k_params = jax.random.split(key)

    # Small shapes implied by the module: a batch of observations -> scalar V(s).
    # batch deliberately not a multiple of the tile to exercise pad + slice.
    batch = 200
    obs_dim = 16        # args.obs_dim_n[agent_id]
    hidden_dim = 32     # args.critic_hidden_dim
    # TODO(synk): widening hidden to 128 / packing multiple agents' critics (to
    # fill MXU/VPU lanes) is a model-config change, not done in this kernel.

    state = jax.random.normal(k_state, (batch, obs_dim), jnp.float32)
    params = init_params(k_params, obs_dim, hidden_dim)

    # block_b=128 -> padded batch 256, grid=(2,): pipelined + dual-TC shardable.
    v = mlp_critic_forward(state, *params, block_b=128)
    v = jax.block_until_ready(v)
    assert v.shape == (batch, 1)

    w1, b1, w2, b2, w3, b3 = params

    # Tight check vs. a reference using the same bf16-operand / f32-accum math.
    bf16 = jnp.bfloat16
    h = jnp.tanh(jnp.dot(state.astype(bf16), w1.astype(bf16),
                         preferred_element_type=jnp.float32) + b1)
    h = jnp.tanh(jnp.dot(h.astype(bf16), w2.astype(bf16),
                         preferred_element_type=jnp.float32) + b2)
    ref_bf16 = jnp.dot(h.astype(bf16), w3.astype(bf16),
                       preferred_element_type=jnp.float32) + b3
    assert jnp.allclose(v, ref_bf16, atol=5e-3), "mismatch vs bf16 reference"

    # Looser check vs. the exact f32 PyTorch-equivalent math (bf16 drift bound).
    ref_f32 = mlp_critic_reference(state, *params)
    assert jnp.allclose(v, ref_f32, atol=5e-2), "mismatch vs f32 reference"

    print("KERNEL_OK")
</pallas_src>

<mosaic_0001>
module attributes {stable_mosaic.version = 11 : i64} {
  func.func @critic_kernel(%arg0: i32, %arg1: memref<128x16xf32, #tpu.memory_space<vmem>>, %arg2: memref<16x32xbf16, #tpu.memory_space<vmem>>, %arg3: memref<1x32xf32, #tpu.memory_space<vmem>>, %arg4: memref<32x32xbf16, #tpu.memory_space<vmem>>, %arg5: memref<1x32xf32, #tpu.memory_space<vmem>>, %arg6: memref<1x32xbf16, #tpu.memory_space<vmem>>, %arg7: memref<1x1xf32, #tpu.memory_space<smem>>, %arg8: memref<1x128xf32, #tpu.memory_space<vmem>>) attributes {dimension_semantics = [#tpu.dimension_semantics<parallel>], iteration_bounds = array<i64: 2>, scalar_prefetch = 0 : i64, scratch_operands = 0 : i64, tpu.core_type = #tpu.core_type<tc>, window_params = [{transform_indices = @transform_0, window_bounds = array<i64: 128, 16>}, {pipeline_mode = #tpu.pipeline_mode<synchronous>, transform_indices = @transform_1, window_bounds = array<i64: 16, 32>}, {pipeline_mode = #tpu.pipeline_mode<synchronous>, transform_indices = @transform_2, window_bounds = array<i64: 1, 32>}, {pipeline_mode = #tpu.pipeline_mode<synchronous>, transform_indices = @transform_3, window_bounds = array<i64: 32, 32>}, {pipeline_mode = #tpu.pipeline_mode<synchronous>, transform_indices = @transform_4, window_bounds = array<i64: 1, 32>}, {pipeline_mode = #tpu.pipeline_mode<synchronous>, transform_indices = @transform_5, window_bounds = array<i64: 1, 32>}, {transform_indices = @transform_6, window_bounds = array<i64: 1, 1>}, {transform_indices = @transform_7, window_bounds = array<i64: 1, 128>}]} {
    %c0 = arith.constant 0 : index
    %c0_0 = arith.constant 0 : index
    %0 = vector.load %arg1[%c0, %c0_0] : memref<128x16xf32, #tpu.memory_space<vmem>>, vector<128x16xf32>
    %1 = arith.truncf %0 : vector<128x16xf32> to vector<128x16xbf16>
    %c0_1 = arith.constant 0 : index
    %c0_2 = arith.constant 0 : index
    %2 = vector.load %arg2[%c0_1, %c0_2] : memref<16x32xbf16, #tpu.memory_space<vmem>>, vector<16x32xbf16>
    %cst = arith.constant dense<0.000000e+00> : vector<128x32xf32>
    %3 = tpu.matmul %1, %2, %cst {dimension_numbers = #tpu.dot_dimension_numbers<[1], [0], [0], [1], [0, 0, 1, 1], [], []>} : vector<128x16xbf16>, vector<16x32xbf16>, vector<128x32xf32> -> vector<128x32xf32>
    %c0_3 = arith.constant 0 : index
    %c0_4 = arith.constant 0 : index
    %4 = vector.load %arg3[%c0_3, %c0_4] : memref<1x32xf32, #tpu.memory_space<vmem>>, vector<1x32xf32>
    %5 = vector.broadcast %4 : vector<1x32xf32> to vector<128x32xf32>
    %6 = arith.addf %3, %5 : vector<128x32xf32>
    %7 = math.tanh %6 : vector<128x32xf32>
    %8 = arith.truncf %7 : vector<128x32xf32> to vector<128x32xbf16>
    %c0_5 = arith.constant 0 : index
    %c0_6 = arith.constant 0 : index
    %9 = vector.load %arg4[%c0_5, %c0_6] : memref<32x32xbf16, #tpu.memory_space<vmem>>, vector<32x32xbf16>
    %cst_7 = arith.constant dense<0.000000e+00> : vector<128x32xf32>
    %10 = tpu.matmul %8, %9, %cst_7 {dimension_numbers = #tpu.dot_dimension_numbers<[1], [0], [0], [1], [0, 0, 1, 1], [], []>} : vector<128x32xbf16>, vector<32x32xbf16>, vector<128x32xf32> -> vector<128x32xf32>
    %c0_8 = arith.constant 0 : index
    %c0_9 = arith.constant 0 : index
    %11 = vector.load %arg5[%c0_8, %c0_9] : memref<1x32xf32, #tpu.memory_space<vmem>>, vector<1x32xf32>
    %12 = vector.broadcast %11 : vector<1x32xf32> to vector<128x32xf32>
    %13 = arith.addf %10, %12 : vector<128x32xf32>
    %14 = math.tanh %13 : vector<128x32xf32>
    %c0_10 = arith.constant 0 : index
    %c0_11 = arith.constant 0 : index
    %15 = vector.load %arg6[%c0_10, %c0_11] : memref<1x32xbf16, #tpu.memory_space<vmem>>, vector<1x32xbf16>
    %16 = arith.truncf %14 : vector<128x32xf32> to vector<128x32xbf16>
    "tpu.trace_start"() <{level = 10 : i32, message = "oh,bh->ob"}> : () -> ()
    %cst_12 = arith.constant dense<0.000000e+00> : vector<1x128xf32>
    %17 = tpu.matmul %15, %16, %cst_12 {dimension_numbers = #tpu.dot_dimension_numbers<[1], [1], [0], [0], [0, 0, 1, 0], [], []>} : vector<1x32xbf16>, vector<128x32xbf16>, vector<1x128xf32> -> vector<1x128xf32>
    "tpu.trace_stop"() : () -> ()
    %c0_13 = arith.constant 0 : index
    %c0_14 = arith.constant 0 : index
    %18 = memref.load %arg7[%c0_13, %c0_14] : memref<1x1xf32, #tpu.memory_space<smem>>
    %19 = vector.broadcast %18 : f32 to vector<1x128xf32>
    %20 = arith.addf %17, %19 : vector<1x128xf32>
    %c0_15 = arith.constant 0 : index
    %c0_16 = arith.constant 0 : index
    %21 = vector.load %arg8[%c0_15, %c0_16] : memref<1x128xf32, #tpu.memory_space<vmem>>, vector<1x128xf32>
    tpu.vector_store %arg8[%c0_15, %c0_16], %20 {strides = array<i32>} : memref<1x128xf32, #tpu.memory_space<vmem>>, vector<1x128xf32>,
    return
  }
  func.func @transform_0(%arg0: i32) -> (i32, i32) {
    %c0_i32 = arith.constant 0 : i32
    %c0_i32_0 = arith.constant 0 : i32
    return %arg0, %c0_i32 : i32, i32
  }
  func.func @transform_1(%arg0: i32) -> (i32, i32) {
    %c0_i32 = arith.constant 0 : i32
    %c0_i32_0 = arith.constant 0 : i32
    %c0_i32_1 = arith.constant 0 : i32
    return %c0_i32, %c0_i32_0 : i32, i32
  }
  func.func @transform_2(%arg0: i32) -> (i32, i32) {
    %c0_i32 = arith.constant 0 : i32
    %c0_i32_0 = arith.constant 0 : i32
    %c0_i32_1 = arith.constant 0 : i32
    return %c0_i32, %c0_i32_0 : i32, i32
  }
  func.func @transform_3(%arg0: i32) -> (i32, i32) {
    %c0_i32 = arith.constant 0 : i32
    %c0_i32_0 = arith.constant 0 : i32
    %c0_i32_1 = arith.constant 0 : i32
    return %c0_i32, %c0_i32_0 : i32, i32
  }
  func.func @transform_4(%arg0: i32) -> (i32, i32) {
    %c0_i32 = arith.constant 0 : i32
    %c0_i32_0 = arith.constant 0 : i32
    %c0_i32_1 = arith.constant 0 : i32
    return %c0_i32, %c0_i32_0 : i32, i32
  }
  func.func @transform_5(%arg0: i32) -> (i32, i32) {
    %c0_i32 = arith.constant 0 : i32
    %c0_i32_0 = arith.constant 0 : i32
    %c0_i32_1 = arith.constant 0 : i32
    return %c0_i32, %c0_i32_0 : i32, i32
  }
  func.func @transform_6(%arg0: i32) -> (i32, i32) {
    %c0_i32 = arith.constant 0 : i32
    %c0_i32_0 = arith.constant 0 : i32
    %c0_i32_1 = arith.constant 0 : i32
    return %c0_i32, %c0_i32_0 : i32, i32
  }
  func.func @transform_7(%arg0: i32) -> (i32, i32) {
    %c0_i32 = arith.constant 0 : i32
    %c0_i32_0 = arith.constant 0 : i32
    return %c0_i32, %arg0 : i32, i32
  }
}

</mosaic_0001>

<bundles_post_ra>
// kernel: tpu_custom_call.1
= control target key start
LH: loop header
LB: loop body
LE: loop exit
PB: predicated region body
PF: predicated region fallthrough
CT: control target
= control target key end

     0   :  { %s1313_s0 = inlined_call_operand.vmem [shape: f32[256,16], index: 0, kind: input, shape index: {}]   ;;  %s1314_s1 = inlined_call_operand.vmem [shape: bf16[16,32], index: 1, kind: input, shape index: {}]   ;;  %s1315_s2 = inlined_call_operand.vmem [shape: f32[1,32], index: 2, kind: input, shape index: {}]   ;;  %s1316_s3 = inlined_call_operand.vmem [shape: bf16[32,32], index: 3, kind: input, shape index: {}]   ;;  %s1317_s4 = inlined_call_operand.vmem [shape: f32[1,32], index: 4, kind: input, shape index: {}]   ;;  %s1318_s5 = inlined_call_operand.vmem [shape: bf16[1,32], index: 5, kind: input, shape index: {}]   ;;  %s1319_s6 = inlined_call_operand.<no memory space> [shape: f32[1,1], index: 6, kind: input, shape index: {}]   ;;  %s1320_s7 = inlined_call_operand.hbm [shape: f32[1,256], index: 7, kind: output, shape index: {}]  }
   0x1   :  { %12 = sst [smem:[#allocation2]] %s1319_s6 }
   0x2   :  { %13 = vsyncpa [#allocation4], 0 }
   0x3   :  { %15 = vsyncpa [#allocation4 + $0x1], 0  ;;  %s1108_s26 = smov 0   ;;  %s1110_s27 = smov 0  }
   0x4   :  { %s1112_s28 = smov 0   ;;  %s1114_s29 = smov 0  }
   0x5 LB: > { %s772_s6 = sadd.s32 4294967295, %s1060_s29   ;;  %s773_s30 = sadd.s32 4294967294, %s1060_s29   ;;  %s1060_s29 = sphi %s1114_s29, %s1326_s29   ;;  %s1056_s28 = sphi %s1112_s28, %s1325_s28   ;;  %s1052_s27 = sphi %s1110_s27, %s1324_s27   ;;  %s1048_s26 = sphi %s1108_s26, %s1323_s26  }
   0x6   : > { %s1131_s8 = sadd.s32 1, %s1060_s29   ;;  %s180_s9 = sadd.s32 1, %s1056_s28 }
   0x7   : > { %s177_s10 = ssub.s32 %s1060_s29, %s1131_s8  ;;  %p190_p0 = scmp.ne.s32.totalorder %s1056_s28, %s1052_s27 }
   0x8   : > { %p178_p1 = scmp.eq.s32.totalorder %s177_s10, 0  ;;  %p191_p2 = scmp.eq.s32.totalorder %s772_s6, 1 }
   0x9   : > { %p196_p3 = scmp.ne.s32.totalorder %s1052_s27, %s1048_s26  ;;  %p197_p4 = scmp.eq.s32.totalorder %s773_s30, 1 }
   0xa   : > { %s1141_s11 = scalar_select %p178_p1, %s1056_s28, %s180_s9  }
   0xb   : > { %p1143_p5 = por %p191_p2, %p190_p0  ;;  %p1147_p6 = por %p197_p4, %p196_p3 }
   0xc   : > { %p776_p7 = scmp.ge.s32.totalorder %s1060_s29, 1  ;;  %p242_p8 = scmp.lt.s32.totalorder %s1060_s29, 3 }
   0xe   : > { %p243_p9 = pnand %p776_p7, %p242_p8 }
   0xf   : > { %v931_v0 = vld [vmem:[%s1314_s1] sm:$0xff] (!%p243_p9)   ;;  %s1156_s16 = sshll.u32 (!%p243_p9), %s772_s6, 4  ;;  %vm319_vm0 = vcmask (!%p243_p9), 130048   ;;  %v933_v26 = vld [vmem:[%s1316_s3 + $0x8] sm:$0xff] (!%p243_p9)   ;;  %vm488_vm1 = vcmask (!%p243_p9), 261120   ;;  %vm1063_vm2 = vmmov (!%p243_p9), 0  }
  0x10   : > { %246 = sbr.rel (%p243_p9) target bundleno = 784 (0x310), region = 48  ;;  %p274_p10 = scmp.lt.s32.totalorder (!%p243_p9), %s1156_s16, 31  ;;  %832 = vmatprep.subr.bf16.mxu1 (!%p243_p9), %v931_v0  ;;  %v932_v1 = vld [vmem:[%s1316_s3] sm:$0xff] (!%p243_p9)  }
  0x11   : > { %833 = vmatpush3.bf16.msra.mxu1 (!%p243_p9), %v931_v0  ;;  %v1198_v27 = vld [vmem:[%s1315_s2] ss:$0 sm:$0xff] (!%p243_p9)  ;;  %s635_s17 = sld [smem:[#allocation2]] (!%p243_p9)  ;;  %s271_s18 = sand.u32 (!%p243_p9), 1, %s1052_s27  }
  0x12   : > { %850 = vmatprep.subr.bf16.mxu1 (!%p243_p9), %v932_v1  ;;  %s706_s24 = scalar_lea.sflag (!%p243_p9), [#allocation4], %s271_s18  ;;  %s1064_s6 = smov (!%p243_p9), [#allocation3]  }
  0x13   : > { %s1002_s30 = sshll.u32 (!%p243_p9), %s1064_s6, 4  ;;  %s1003_s30 = int_to_ptr.vmem [resolvable:$false] %s1002_s30 }
  0x14   : > { %s1004_s9 = scalar_lea.vmem (!%p243_p9), %s1003_s30, 32 }
  0x17   : > { %s275_s19 = scalar_select %p274_p10, %s1156_s16, 31 }
  0x19   : > { %s778_s20 = sshll.u32 %s275_s19, 3  ;;  %s272_s19 = scalar_lea.vmem [#allocation3], %s271_s18 }
  0x1a   : > { %s1166_s23 = scalar_lea.vmem %s1313_s0, %s778_s20  ;;  %s718_s20 = sshll.u32 %s272_s19, 4  ;;  %s1273_s20 = int_to_ptr.vmem [resolvable:$true] %s718_s20 }
  0x1b   : > { %v280_v2 = vld [vmem:[%s1166_s23] sm:$0xff]  ;;  %v281_v3 = vld [vmem:[%s1166_s23 + $0x8] sm:$0xff]  ;;  %v282_v4 = vld [vmem:[%s1166_s23 + $0x10] sm:$0xff]  ;;  %s998_s25 = scalar_lea.vmem %s1273_s20, 16  ;;  %p1005_p0 = scmp.lt.s32.totalorder %s1273_s20, %s1003_s30 }
  0x1c   : > { %v296_v5 = vpack.c.bf16 %v281_v3, %v280_v2  ;;  %v283_v6 = vld [vmem:[%s1166_s23 + $0x18] sm:$0xff]  ;;  %v284_v7 = vld [vmem:[%s1166_s23 + $0x20] sm:$0xff]  ;;  %v285_v8 = vld [vmem:[%s1166_s23 + $0x28] sm:$0xff]  ;;  %p999_p11 = scmp.ne.s32.totalorder %s1273_s20, %s998_s25  ;;  %p1006_p1 = scmp.lt.s32.totalorder %s1004_s9, %s998_s25 }
  0x1d   : > { %v297_v9 = vpack.c.bf16 %v283_v6, %v282_v4  ;;  %v298_v10 = vpack.c.bf16 %v285_v8, %v284_v7  ;;  %v286_v11 = vld [vmem:[%s1166_s23 + $0x30] sm:$0xff]  ;;  %v287_v12 = vld [vmem:[%s1166_s23 + $0x38] sm:$0xff]  ;;  %v288_v13 = vld [vmem:[%s1166_s23 + $0x40] sm:$0xff] }
  0x1e   : > { %834 = vmatprep.mubr.msk.bf16.mxu1 %vm319_vm0, %v296_v5  ;;  %v289_v14 = vld [vmem:[%s1166_s23 + $0x48] sm:$0xff]  ;;  %v299_v15 = vpack.c.bf16 %v287_v12, %v286_v11  ;;  %v290_v17 = vld [vmem:[%s1166_s23 + $0x50] sm:$0xff]  ;;  %v291_v18 = vld [vmem:[%s1166_s23 + $0x58] sm:$0xff]  ;;  %p1000_p12 = pnand %p999_p11, %p1143_p5  ;;  %p1007_p2 = por %p1006_p1, %p1005_p0 }
  0x1f   : > { %835 = vmatmul.mubr.msk.bf16.vlgmr.msra.gmra.mrb[0].mxu1 %vm319_vm0, %v297_v9  ;;  %v300_v16 = vpack.c.bf16 %v289_v14, %v288_v13  ;;  %v292_v19 = vld [vmem:[%s1166_s23 + $0x60] sm:$0xff]  ;;  %v293_v20 = vld [vmem:[%s1166_s23 + $0x68] sm:$0xff]  ;;  %v301_v21 = vpack.c.bf16 %v291_v18, %v290_v17  ;;  %v294_v23 = vld [vmem:[%s1166_s23 + $0x70] sm:$0xff] }
  0x20   : > { %838 = vmatprep.mubr.msk.bf16.mxu1 %vm319_vm0, %v298_v10  ;;  %851 = vmatpush3.bf16.msra.mxu1 %v932_v1  ;;  %v302_v22 = vpack.c.bf16 %v293_v20, %v292_v19  ;;  %v295_v24 = vld [vmem:[%s1166_s23 + $0x78] sm:$0xff]  ;;  %v1062_v20 = vmov 0.0   ;;  %s1271_s23 = scalar_lea.hbm %s1320_s7, %s1156_s16  ;;  %p1001_p13 = pneg %p1000_p12 }
  0x21   : > { %v303_v25 = vpack.c.bf16 %v295_v24, %v294_v23  ;;  %852 = vmatprep.subr.bf16.mxu1 %v933_v26  ;;  %870 = vmatprep.subr.bf16.mxu0 %v1062_v20 }
  0x22   : > { %886 = vmatprep.mubr.msk.bf16.mxu0 %vm1063_vm2, %v1062_v20  ;;  %p1008_p3 = pnand %p1007_p2, %p1001_p13 }
  0x24   : > { %853 = vmatpush3.bf16.msra.mxu1 %v933_v26 }
  0x27   : > { %839 = vmatmul.mubr.msk.bf16.gmra.mrb[4].mxu1 %vm319_vm0, %v299_v15 }
  0x28   : > { %842 = vmatprep.mubr.msk.bf16.mxu1 %vm319_vm0, %v300_v16 }
  0x2f   : > { %843 = vmatmul.mubr.msk.bf16.gmra.mrb[8].mxu1 %vm319_vm0, %v301_v21  ;;  %v1229_v21 = vld [vmem:[%s1317_s4] ss:$0 sm:$0xff] }
  0x30   : > { %846 = vmatprep.mubr.msk.bf16.mxu1 %vm319_vm0, %v302_v22 }
  0x37   : > { %847 = vmatmul.mubr.msk.bf16.gmra.mrb[12].mxu1 %vm319_vm0, %v303_v25 }
  0xf2   : > { %v836_v28 = vpop.f32.mrb[0].mxu1 }
  0xf3   : > { %v387_v29 = vadd.f32 %v836_v28, %v1198_v27  ;;  %v378_v30 = vpop.f32.mrb[1].mxu1 }
  0xf4   : > { %v379_v31 = vadd.f32 %v1198_v27, %v378_v30  ;;  %v837_v32 = vpop.f32.mrb[2].mxu1 }
  0xf5   : > { %934 = vtanh.f32 %v387_v29  ;;  %v390_v33 = vadd.f32 %v837_v32, %v1198_v27  ;;  %v381_v34 = vpop.f32.mrb[3].mxu1 }
  0xf6   : > { %936 = vtanh.f32 %v379_v31  ;;  %v382_v35 = vadd.f32 %v1198_v27, %v381_v34 }
  0xf7   : > { %938 = vtanh.f32 %v390_v33 }
  0xf8   : > { %940 = vtanh.f32 %v382_v35 }
  0xfa   : > { %v840_v36 = vpop.f32.mrb[4].mxu1 }
  0xfb   : > { %v403_v37 = vadd.f32 %v840_v36, %v1198_v27  ;;  %v394_v38 = vpop.f32.mrb[5].mxu1 }
  0xfc   : > { %v395_v39 = vadd.f32 %v1198_v27, %v394_v38  ;;  %v841_v40 = vpop.f32.mrb[6].mxu1 }
  0xfd   : > { %942 = vtanh.f32 %v403_v37  ;;  %v406_v41 = vadd.f32 %v841_v40, %v1198_v27  ;;  %v397_v42 = vpop.f32.mrb[7].mxu1 }
  0xfe   : > { %944 = vtanh.f32 %v395_v39  ;;  %v398_v43 = vadd.f32 %v1198_v27, %v397_v42 }
  0xff   : > { %v935_v44 = vpop.eup %934  ;;  %946 = vtanh.f32 %v406_v41 }
 0x100   : > { %v937_v45 = vpop.eup %936  ;;  %948 = vtanh.f32 %v398_v43 }
 0x101   : > { %v939_v46 = vpop.eup %938 }
 0x102   : > { %v941_v47 = vpop.eup %940  ;;  %v458_v48 = vpack.c.bf16 %v939_v46, %v935_v44  ;;  %v844_v49 = vpop.f32.mrb[8].mxu1 }
 0x103   : > { %v457_v50 = vpack.c.bf16 %v941_v47, %v937_v45  ;;  %v419_v51 = vadd.f32 %v844_v49, %v1198_v27  ;;  %v410_v52 = vpop.f32.mrb[9].mxu1 }
 0x104   : > { %v411_v53 = vadd.f32 %v1198_v27, %v410_v52  ;;  %v845_v54 = vpop.f32.mrb[10].mxu1 }
 0x105   : > { %854 = vmatprep.mubr.msk.bf16.mxu1 %vm488_vm1, %v457_v50  ;;  %950 = vtanh.f32 %v419_v51  ;;  %v422_v55 = vadd.f32 %v845_v54, %v1198_v27  ;;  %v413_v56 = vpop.f32.mrb[11].mxu1 }
 0x106   : > { %855 = vmatmul.mubr.msk.bf16.vlgmr.msra.gmra.mrb[16].mxu1 %vm488_vm1, %v458_v48  ;;  %952 = vtanh.f32 %v411_v53  ;;  %v414_v57 = vadd.f32 %v1198_v27, %v413_v56 }
 0x107   : > { %v943_v58 = vpop.eup %942  ;;  %954 = vtanh.f32 %v422_v55 }
 0x108   : > { %v945_v59 = vpop.eup %944  ;;  %956 = vtanh.f32 %v414_v57 }
 0x109   : > { %v947_v60 = vpop.eup %946 }
 0x10a   : > { %v949_v61 = vpop.eup %948  ;;  %v460_v62 = vpack.c.bf16 %v947_v60, %v943_v58  ;;  %v848_v63 = vpop.f32.mrb[12].mxu1 }
 0x10b   : > { %v459_v0 = vpack.c.bf16 %v949_v61, %v945_v59  ;;  %v435_v1 = vadd.f32 %v848_v63, %v1198_v27  ;;  %v426_v2 = vpop.f32.mrb[13].mxu1 }
 0x10c   : > { %v427_v3 = vadd.f32 %v1198_v27, %v426_v2  ;;  %v849_v4 = vpop.f32.mrb[14].mxu1 }
 0x10d   : > { %858 = vmatprep.mubr.msk.bf16.mxu1 %vm488_vm1, %v459_v0  ;;  %958 = vtanh.f32 %v435_v1  ;;  %v438_v5 = vadd.f32 %v849_v4, %v1198_v27  ;;  %v429_v6 = vpop.f32.mrb[15].mxu1 }
 0x10e   : > { %859 = vmatmul.mubr.msk.bf16.gmra.mrb[20].mxu1 %vm488_vm1, %v460_v62  ;;  %960 = vtanh.f32 %v427_v3  ;;  %v430_v7 = vadd.f32 %v1198_v27, %v429_v6 }
 0x10f   : > { %v951_v8 = vpop.eup %950  ;;  %962 = vtanh.f32 %v438_v5 }
 0x110   : > { %v953_v9 = vpop.eup %952  ;;  %964 = vtanh.f32 %v430_v7 }
 0x111   : > { %v955_v10 = vpop.eup %954 }
 0x112   : > { %v957_v11 = vpop.eup %956  ;;  %v462_v12 = vpack.c.bf16 %v955_v10, %v951_v8 }
 0x113   : > { %v461_v13 = vpack.c.bf16 %v957_v11, %v953_v9 }
 0x115   : > { %862 = vmatprep.mubr.msk.bf16.mxu1 %vm488_vm1, %v461_v13 }
 0x116   : > { %863 = vmatmul.mubr.msk.bf16.gmra.mrb[24].mxu1 %vm488_vm1, %v462_v12 }
 0x117   : > { %v959_v14 = vpop.eup %958 }
 0x118   : > { %v961_v15 = vpop.eup %960 }
 0x119   : > { %v963_v16 = vpop.eup %962 }
 0x11a   : > { %v965_v17 = vpop.eup %964  ;;  %v464_v18 = vpack.c.bf16 %v963_v16, %v959_v14 }
 0x11b   : > { %v463_v19 = vpack.c.bf16 %v965_v17, %v961_v15 }
 0x11d   : > { %866 = vmatprep.mubr.msk.bf16.mxu1 %vm488_vm1, %v463_v19 }
 0x11e   : > { %867 = vmatmul.mubr.msk.bf16.gmra.mrb[28].mxu1 %vm488_vm1, %v464_v18 }
 0x1d9   : > { %v856_v22 = vpop.f32.mrb[16].mxu1 }
 0x1da   : > { %v556_v23 = vadd.f32 %v856_v22, %v1229_v21  ;;  %v547_v24 = vpop.f32.mrb[17].mxu1 }
 0x1db   : > { %v548_v25 = vadd.f32 %v1229_v21, %v547_v24  ;;  %v857_v26 = vpop.f32.mrb[18].mxu1  ;;  %v636_v24 = vstv %s635_s17 }
 0x1dc   : > { %966 = vtanh.f32 %v556_v23  ;;  %v559_v27 = vadd.f32 %v857_v26, %v1229_v21  ;;  %v550_v28 = vpop.f32.mrb[19].mxu1  ;;  %v626_v23 = vld [vmem:[%s1318_s5] sm:$0x1] }
 0x1dd   : > { %968 = vtanh.f32 %v548_v25  ;;  %v551_v29 = vadd.f32 %v1229_v21, %v550_v28 }
 0x1de   : > { %970 = vtanh.f32 %v559_v27 }
 0x1df   : > { %972 = vtanh.f32 %v551_v29 }
 0x1e1   : > { %v860_v30 = vpop.f32.mrb[20].mxu1 }
 0x1e2   : > { %v572_v31 = vadd.f32 %v860_v30, %v1229_v21  ;;  %v563_v32 = vpop.f32.mrb[21].mxu1 }
 0x1e3   : > { %v564_v33 = vadd.f32 %v1229_v21, %v563_v32  ;;  %v861_v34 = vpop.f32.mrb[22].mxu1 }
 0x1e4   : > { %974 = vtanh.f32 %v572_v31  ;;  %v575_v35 = vadd.f32 %v861_v34, %v1229_v21  ;;  %v566_v36 = vpop.f32.mrb[23].mxu1 }
 0x1e5   : > { %976 = vtanh.f32 %v564_v33  ;;  %v567_v37 = vadd.f32 %v1229_v21, %v566_v36 }
 0x1e6   : > { %v967_v38 = vpop.eup %966  ;;  %978 = vtanh.f32 %v575_v35 }
 0x1e7   : > { %v969_v39 = vpop.eup %968  ;;  %980 = vtanh.f32 %v567_v37 }
 0x1e8   : > { %v971_v40 = vpop.eup %970 }
 0x1e9   : > { %v973_v41 = vpop.eup %972  ;;  %v864_v42 = vpop.f32.mrb[24].mxu1  ;;  %v628_v43 = vpack.c.bf16 %v971_v40, %v967_v38 }
 0x1ea   : > { %v627_v44 = vpack.c.bf16 %v973_v41, %v969_v39  ;;  %v588_v45 = vadd.f32 %v864_v42, %v1229_v21  ;;  %v579_v46 = vpop.f32.mrb[25].mxu1 }
 0x1eb   : > { %v580_v47 = vadd.f32 %v1229_v21, %v579_v46  ;;  %v865_v48 = vpop.f32.mrb[26].mxu1  ;;  %v644_v0 = vsel %vm488_vm1, %v628_v43, 0 }
 0x1ec   : > { %v641_v49 = vsel %vm488_vm1, %v627_v44, 0  ;;  %982 = vtanh.f32 %v588_v45  ;;  %v591_v50 = vadd.f32 %v865_v48, %v1229_v21  ;;  %v582_v51 = vpop.f32.mrb[27].mxu1 }
 0x1ed   : > { %871 = vmatpush3.bf16.xpose.msra.mxu0 %v641_v49  ;;  %984 = vtanh.f32 %v580_v47  ;;  %v583_v52 = vadd.f32 %v1229_v21, %v582_v51 }
 0x1ee   : > { %v975_v53 = vpop.eup %974  ;;  %986 = vtanh.f32 %v591_v50  ;;  %872 = vmatprep.subr.bf16.mxu0 %v1062_v20 }
 0x1ef   : > { %v977_v54 = vpop.eup %976  ;;  %988 = vtanh.f32 %v583_v52 }
 0x1f0   : > { %v979_v55 = vpop.eup %978 }
 0x1f1   : > { %v981_v56 = vpop.eup %980  ;;  %v868_v57 = vpop.f32.mrb[28].mxu1  ;;  %v630_v58 = vpack.c.bf16 %v979_v55, %v975_v53 }
 0x1f2   : > { %v629_v59 = vpack.c.bf16 %v981_v56, %v977_v54  ;;  %v604_v60 = vadd.f32 %v868_v57, %v1229_v21  ;;  %v595_v61 = vpop.f32.mrb[29].mxu1 }
 0x1f3   : > { %v596_v62 = vadd.f32 %v1229_v21, %v595_v61  ;;  %v869_v63 = vpop.f32.mrb[30].mxu1  ;;  %v650_v17 = vsel %vm488_vm1, %v630_v58, 0 }
 0x1f4   : > { %990 = vtanh.f32 %v604_v60  ;;  %v607_v1 = vadd.f32 %v869_v63, %v1229_v21  ;;  %v598_v2 = vpop.f32.mrb[31].mxu1  ;;  %v647_v10 = vsel %vm488_vm1, %v629_v59, 0 }
 0x1f5   : > { %873 = vmatpush3.bf16.xpose.msra.mxu0 %v644_v0  ;;  %992 = vtanh.f32 %v596_v62  ;;  %v599_v3 = vadd.f32 %v1229_v21, %v598_v2 }
 0x1f6   : > { %v983_v4 = vpop.eup %982  ;;  %874 = vmatprep.subr.bf16.mxu0 %v1062_v20  ;;  %994 = vtanh.f32 %v607_v1 }
 0x1f7   : > { %v985_v5 = vpop.eup %984  ;;  %996 = vtanh.f32 %v599_v3 }
 0x1f8   : > { %v987_v6 = vpop.eup %986 }
 0x1f9   : > { %v989_v7 = vpop.eup %988  ;;  %v632_v8 = vpack.c.bf16 %v987_v6, %v983_v4 }
 0x1fa   : > { %v631_v9 = vpack.c.bf16 %v989_v7, %v985_v5 }
 0x1fb   : > { %v656_v19 = vsel %vm488_vm1, %v632_v8, 0 }
 0x1fc   : > { %v653_v18 = vsel %vm488_vm1, %v631_v9, 0 }
 0x1fd   : > { %875 = vmatpush3.bf16.xpose.msra.mxu0 %v647_v10 }
 0x1fe   : > { %v991_v11 = vpop.eup %990  ;;  %876 = vmatprep.subr.bf16.mxu0 %v1062_v20 }
 0x1ff   : > { %v993_v12 = vpop.eup %992 }
 0x200   : > { %v995_v13 = vpop.eup %994 }
 0x201   : > { %v997_v14 = vpop.eup %996  ;;  %v634_v15 = vpack.c.bf16 %v995_v13, %v991_v11 }
 0x202   : > { %v633_v16 = vpack.c.bf16 %v997_v14, %v993_v12 }
 0x203   : > { %v662_v22 = vsel %vm488_vm1, %v634_v15, 0 }
 0x204   : > { %v659_v21 = vsel %vm488_vm1, %v633_v16, 0 }
 0x205   : > { %877 = vmatpush3.bf16.xpose.msra.mxu0 %v650_v17 }
 0x206   : > { %878 = vmatprep.subr.bf16.mxu0 %v1062_v20 }
 0x20d   : > { %879 = vmatpush3.bf16.xpose.msra.mxu0 %v653_v18 }
 0x20e   : > { %880 = vmatprep.subr.bf16.mxu0 %v1062_v20 }
 0x215   : > { %881 = vmatpush3.bf16.xpose.msra.mxu0 %v656_v19 }
 0x216   : > { %882 = vmatprep.subr.bf16.mxu0 %v1062_v20 }
 0x21d   : > { %883 = vmatpush3.bf16.xpose.msra.mxu0 %v659_v21 }
 0x21e   : > { %884 = vmatprep.subr.bf16.mxu0 %v1062_v20 }
 0x225   : > { %885 = vmatpush3.bf16.xpose.msra.mxu0 %v662_v22 }
 0x22c   : > { %887 = vmatmul.mubr.msk.bf16.vlgmr.msra.gmra.mrb[0].mxu0 %vm488_vm1, %v626_v23 }
 0x2ff   : > { %v698_v25 = vpop.f32.mrb[0].mxu0 }
 0x300   : > { %v699_v26 = vadd.f32 %v698_v25, %v636_v24  ;;  %v888_v27 = vpop.f32.mrb[1].mxu0 }
 0x301   : > { %v701_v20 = vpop.f32.mrb[2].mxu0 }
 0x302   : > { %704 = vst [vmem:[%s272_s19] sm:$0x1] %v699_v26  ;;  %v889_v28 = vpop.f32.mrb[3].mxu0 }
 0x303   : > { %1011 = shalt.err (!%p1008_p3)
}
 0x304   : > { %s1012_s16 = scalar_lea.hbm %s1271_s23, 16  ;;  %s1016_s15 = scalar_lea.hbm %s1320_s7, 32 }
 0x305   : > { %p1013_p4 = scmp.ne.s32.totalorder %s1271_s23, %s1012_s16  ;;  %p1017_p9 = scmp.lt.u32.totalorder %s1271_s23, %s1320_s7 }
 0x306   : > { %p1018_p10 = scmp.lt.u32.totalorder %s1016_s15, %s1012_s16  ;;  %p1020_p12 = scmp.lt.u32.totalorder %s1012_s16, %s1271_s23 }
 0x307   : > { %p1014_p7 = pnand %p1013_p4, %p1143_p5 }
 0x308   : > { %p1019_p11 = por %p1018_p10, %p1017_p9 }
 0x309   : > { %p1015_p8 = pneg %p1014_p7 }
 0x30a   : > { %p1021_p13 = por %p1020_p12, %p1019_p11 }
 0x30c   : > { %p1022_p0 = pnand %p1021_p13, %p1015_p8 }
 0x30e   : > { %1025 = shalt.err (!%p1022_p0)
}
 0x30f   : > { %890 = dma.vmem_to_hbm [thread:$0]  (%p1143_p5), %s1273_s20, 16, %s1271_s23, %s706_s24  }
 0x310 PF: > { %p896_p1 = scmp.ge.s32.totalorder %s1060_s29, 2  ;;  %s730_s19 = sand.u32 1, %s1048_s26  }
 0x311   : > { %s731_s21 = scalar_lea.sflag [#allocation4], %s730_s19 }
 0x312   : > { %p893_p2 = pnand %p896_p1, %p1147_p6 }
 0x314   : > { %1043 = dma.done.wait (!%p893_p2), %s731_s21, 16  }
 0x315   : > { %1045 = vsyncadd (!%p893_p2), %s731_s21, 4294967280  ;;  %p18_p3 = scmp.ge.s32.totalorder %s1131_s8, 4   ;;  %s1323_s26 = smov %s1052_s27 }
 0x316   : > { %s1324_s27 = smov %s1056_s28  ;;  %s1325_s28 = smov %s1141_s11 }
 0x317   : > { %s1326_s29 = smov %s1131_s8  ;;  %20 = sbr.rel (!%p18_p3) target bundleno = 5 (0x5), region = 83 }
 0x31e   :  { %735 = vsyncpa [#allocation4], 1 }
 0x31f   :  { %737 = vsyncpa [#allocation4 + $0x1], 1 }

</bundles_post_ra>
